<compile_context>
chip_gen: v7x
topology: tpu7x:2x2x1
jax: 0.10.0
libtpu: 0.0.40
codegen_flags: <defaults>
</compile_context>

<pallas_src>
import functools

import jax
import jax.numpy as jnp
from jax.experimental import pallas as pl
from jax.experimental.pallas import tpu as pltpu

LN_EPS = 1e-5  # torch.nn.LayerNorm default


def _round_up(x, m):
    return (x + m - 1) // m * m


# ---------------------------------------------------------------------------
# Fused kernel: the entire MLP for one batch tile.
# ---------------------------------------------------------------------------
def _make_fused_kernel(num_layers, matmul_dtype):
    def kernel(*refs):
        # refs = (x_ref, *param_refs, o_ref); params are flattened per layer as
        # (w, b, gamma, beta) for hidden layers and (w, b) for the last layer.
        x_ref, o_ref = refs[0], refs[-1]
        params = refs[1:-1]

        h = x_ref[...].astype(jnp.float32)            # (TB, Cin)
        p = 0
        for li in range(num_layers):
            is_last = li == num_layers - 1
            w = params[p][...]                        # (Cin_l, Cout_l)
            b = params[p + 1][...]                    # (1, Cout_l)
            p += 2

            # MXU matmul with f32 accumulation; bias folded into the f32 result.
            y = jnp.dot(h.astype(matmul_dtype), w.astype(matmul_dtype),
                        preferred_element_type=jnp.float32)
            y = y + b.astype(jnp.float32)

            if not is_last:
                gamma = params[p][...]                # (1, Cout_l)
                beta = params[p + 1][...]             # (1, Cout_l)
                p += 2
                # LayerNorm over features (biased variance, PyTorch semantics),
                # always in f32.
                mean = jnp.mean(y, axis=-1, keepdims=True)
                c = y - mean
                var = jnp.mean(c * c, axis=-1, keepdims=True)
                y = c * jax.lax.rsqrt(var + LN_EPS)
                y = y * gamma.astype(jnp.float32) + beta.astype(jnp.float32)
                # SiLU
                y = y * jax.nn.sigmoid(y)
            h = y

        o_ref[...] = h.astype(o_ref.dtype)

    return kernel


# ---------------------------------------------------------------------------
# Wrapper
# ---------------------------------------------------------------------------
def radial_function_forward(x, layers, *, tb=256, matmul_dtype=jnp.float32):
    """Fused forward pass of RadialFunction.

    x:      [n, channels_list[0]]
    layers: list of dicts; hidden layers have {"w","b","gamma","beta"}, the
            final layer only {"w","b"}; w is [in, out], the rest [1, out].
    tb:     batch tile (rows per grid step). Sweep 256/512/1024 on real sizes;
            keep (tb, max_channels) double-buffered tiles under the scoped
            VMEM limit (tiny here).
    matmul_dtype: matmul operand dtype (jnp.bfloat16 on v6e/v7x for 2x MXU
            rate / half activation traffic; LN/SiLU always stay f32).
    """
    n, cin = x.shape
    cout = layers[-1]["w"].shape[1]

    # Effective batch tile: multiple of 8 (sublane), no bigger than needed.
    n8 = _round_up(max(n, 1), 8)
    tb_eff = min(_round_up(tb, 8), n8)
    n_pad = _round_up(n, tb_eff)
    if n_pad != n:
        x = jnp.pad(x, ((0, n_pad - n), (0, 0)))

    # Flatten params; each is a full-array VMEM block with a constant
    # index_map, so it is DMA'd once and stays resident across the grid.
    flat_params, param_specs = [], []
    for li, layer in enumerate(layers):
        names = ("w", "b") if li == len(layers) - 1 else ("w", "b", "gamma", "beta")
        for name in names:
            param = layer[name]
            flat_params.append(param)
            param_specs.append(pl.BlockSpec(param.shape, lambda i: (0, 0)))

    out = pl.pallas_call(
        _make_fused_kernel(len(layers), matmul_dtype),
        out_shape=jax.ShapeDtypeStruct((n_pad, cout), x.dtype),
        grid_spec=pl.GridSpec(
            grid=(n_pad // tb_eff,),
            in_specs=[pl.BlockSpec((tb_eff, cin), lambda i: (i, 0))] + param_specs,
            out_specs=pl.BlockSpec((tb_eff, cout), lambda i: (i, 0)),
        ),
        compiler_params=pltpu.CompilerParams(
            dimension_semantics=("parallel",),   # megacore-shard the batch axis
        ),
    )(x, *flat_params)
    return out[:n]


# ---------------------------------------------------------------------------
# Deterministic parameter init (mimics nn.Linear default init shapes/dtypes)
# ---------------------------------------------------------------------------
def init_params(key, channels_list, dtype=jnp.float32):
    layers = []
    cin = channels_list[0]
    for i in range(1, len(channels_list)):
        cout = channels_list[i]
        key, kw, kb = jax.random.split(key, 3)
        bound = 1.0 / (cin ** 0.5)
        w = jax.random.uniform(kw, (cin, cout), dtype, -bound, bound)  # [in, out]
        b = jax.random.uniform(kb, (1, cout), dtype, -bound, bound)
        layer = {"w": w, "b": b}
        if i != len(channels_list) - 1:
            layer["gamma"] = jnp.ones((1, cout), dtype)   # LayerNorm weight
            layer["beta"] = jnp.zeros((1, cout), dtype)   # LayerNorm bias
        layers.append(layer)
        cin = cout
    return layers


# ---------------------------------------------------------------------------
# Pure-JAX reference for sanity check
# ---------------------------------------------------------------------------
def radial_function_ref(x, layers):
    for li, layer in enumerate(layers):
        x = x @ layer["w"] + layer["b"]
        if li != len(layers) - 1:
            mean = jnp.mean(x, axis=-1, keepdims=True)
            var = jnp.mean((x - mean) ** 2, axis=-1, keepdims=True)
            x = (x - mean) / jnp.sqrt(var + LN_EPS) * layer["gamma"] + layer["beta"]
            x = x * jax.nn.sigmoid(x)
    return x


if __name__ == "__main__":
    key = jax.random.PRNGKey(0)
    channels_list = [32, 64, 64, 16]   # RadialFunction(channels_list)

    kp, kx1, kx2 = jax.random.split(key, 3)
    layers = init_params(kp, channels_list)

    fwd = jax.jit(functools.partial(radial_function_forward, tb=256))

    # Small batch, NOT a multiple of 8/tb -> exercises padding, single grid step.
    x_small = jax.random.normal(kx1, (20, channels_list[0]), jnp.float32)
    out_small = jax.block_until_ready(fwd(x_small, layers))
    ref_small = radial_function_ref(x_small, layers)
    assert out_small.shape == (20, channels_list[-1])
    assert jnp.allclose(out_small, ref_small, atol=1e-4, rtol=1e-4), "f32 small mismatch"

    # Larger batch -> multi-step parallel grid (3 steps of tb=256 after padding).
    x_big = jax.random.normal(kx2, (600, channels_list[0]), jnp.float32)
    out_big = jax.block_until_ready(fwd(x_big, layers))
    ref_big = radial_function_ref(x_big, layers)
    assert out_big.shape == (600, channels_list[-1])
    assert jnp.allclose(out_big, ref_big, atol=1e-4, rtol=1e-4), "f32 big mismatch"

    # Optional bf16-matmul path (v6e/v7x optimization); LN/SiLU stay in f32.
    fwd_bf16 = jax.jit(functools.partial(radial_function_forward, tb=256,
                                         matmul_dtype=jnp.bfloat16))
    out_bf16 = jax.block_until_ready(fwd_bf16(x_big, layers))
    assert out_bf16.shape == (600, channels_list[-1])
    assert jnp.allclose(out_bf16, ref_big, atol=1e-1, rtol=1e-1), "bf16 mismatch"

    print("KERNEL_OK")
</pallas_src>

<mosaic_0001>
module attributes {stable_mosaic.version = 11 : i64} {
  func.func @kernel(%arg0: i32, %arg1: memref<24x32xf32, #tpu.memory_space<vmem>>, %arg2: memref<32x64xf32, #tpu.memory_space<vmem>>, %arg3: memref<1x64xf32, #tpu.memory_space<vmem>>, %arg4: memref<1x64xf32, #tpu.memory_space<vmem>>, %arg5: memref<1x64xf32, #tpu.memory_space<vmem>>, %arg6: memref<64x64xf32, #tpu.memory_space<vmem>>, %arg7: memref<1x64xf32, #tpu.memory_space<vmem>>, %arg8: memref<1x64xf32, #tpu.memory_space<vmem>>, %arg9: memref<1x64xf32, #tpu.memory_space<vmem>>, %arg10: memref<64x16xf32, #tpu.memory_space<vmem>>, %arg11: memref<1x16xf32, #tpu.memory_space<vmem>>, %arg12: memref<24x16xf32, #tpu.memory_space<vmem>>) attributes {dimension_semantics = [#tpu.dimension_semantics<parallel>], iteration_bounds = array<i64: 1>, scalar_prefetch = 0 : i64, scratch_operands = 0 : i64, tpu.core_type = #tpu.core_type<tc>, window_params = [{transform_indices = @transform_0, window_bounds = array<i64: 24, 32>}, {pipeline_mode = #tpu.pipeline_mode<synchronous>, transform_indices = @transform_1, window_bounds = array<i64: 32, 64>}, {pipeline_mode = #tpu.pipeline_mode<synchronous>, transform_indices = @transform_2, window_bounds = array<i64: 1, 64>}, {pipeline_mode = #tpu.pipeline_mode<synchronous>, transform_indices = @transform_3, window_bounds = array<i64: 1, 64>}, {pipeline_mode = #tpu.pipeline_mode<synchronous>, transform_indices = @transform_4, window_bounds = array<i64: 1, 64>}, {pipeline_mode = #tpu.pipeline_mode<synchronous>, transform_indices = @transform_5, window_bounds = array<i64: 64, 64>}, {pipeline_mode = #tpu.pipeline_mode<synchronous>, transform_indices = @transform_6, window_bounds = array<i64: 1, 64>}, {pipeline_mode = #tpu.pipeline_mode<synchronous>, transform_indices = @transform_7, window_bounds = array<i64: 1, 64>}, {pipeline_mode = #tpu.pipeline_mode<synchronous>, transform_indices = @transform_8, window_bounds = array<i64: 1, 64>}, {pipeline_mode = #tpu.pipeline_mode<synchronous>, transform_indices = @transform_9, window_bounds = array<i64: 64, 16>}, {pipeline_mode = #tpu.pipeline_mode<synchronous>, transform_indices = @transform_10, window_bounds = array<i64: 1, 16>}, {transform_indices = @transform_11, window_bounds = array<i64: 24, 16>}]} {
    %c0 = arith.constant 0 : index
    %c0_0 = arith.constant 0 : index
    %0 = vector.load %arg1[%c0, %c0_0] : memref<24x32xf32, #tpu.memory_space<vmem>>, vector<24x32xf32>
    %c0_1 = arith.constant 0 : index
    %c0_2 = arith.constant 0 : index
    %1 = vector.load %arg2[%c0_1, %c0_2] : memref<32x64xf32, #tpu.memory_space<vmem>>, vector<32x64xf32>
    %c0_3 = arith.constant 0 : index
    %c0_4 = arith.constant 0 : index
    %2 = vector.load %arg3[%c0_3, %c0_4] : memref<1x64xf32, #tpu.memory_space<vmem>>, vector<1x64xf32>
    %cst = arith.constant dense<0.000000e+00> : vector<24x64xf32>
    %3 = tpu.matmul %0, %1, %cst {dimension_numbers = #tpu.dot_dimension_numbers<[1], [0], [0], [1], [0, 0, 1, 1], [], []>} : vector<24x32xf32>, vector<32x64xf32>, vector<24x64xf32> -> vector<24x64xf32>
    %4 = vector.broadcast %2 : vector<1x64xf32> to vector<24x64xf32>
    %5 = arith.addf %3, %4 : vector<24x64xf32>
    %c0_5 = arith.constant 0 : index
    %c0_6 = arith.constant 0 : index
    %6 = vector.load %arg4[%c0_5, %c0_6] : memref<1x64xf32, #tpu.memory_space<vmem>>, vector<1x64xf32>
    %c0_7 = arith.constant 0 : index
    %c0_8 = arith.constant 0 : index
    %7 = vector.load %arg5[%c0_7, %c0_8] : memref<1x64xf32, #tpu.memory_space<vmem>>, vector<1x64xf32>
    %cst_9 = arith.constant dense<0.000000e+00> : vector<24xf32>
    %8 = vector.multi_reduction <add>, %5, %cst_9 [1] : vector<24x64xf32> to vector<24xf32>
    %9 = vector.shape_cast %8 : vector<24xf32> to vector<24x1xf32>
    %cst_10 = arith.constant 6.400000e+01 : f32
    %10 = vector.broadcast %cst_10 : f32 to vector<24x1xf32>
    %11 = arith.divf %9, %10 : vector<24x1xf32>
    %12 = vector.broadcast %11 : vector<24x1xf32> to vector<24x64xf32>
    %13 = arith.subf %5, %12 : vector<24x64xf32>
    %14 = arith.mulf %13, %13 : vector<24x64xf32>
    %cst_11 = arith.constant dense<0.000000e+00> : vector<24xf32>
    %15 = vector.multi_reduction <add>, %14, %cst_11 [1] : vector<24x64xf32> to vector<24xf32>
    %16 = vector.shape_cast %15 : vector<24xf32> to vector<24x1xf32>
    %cst_12 = arith.constant 6.400000e+01 : f32
    %17 = vector.broadcast %cst_12 : f32 to vector<24x1xf32>
    %18 = arith.divf %16, %17 : vector<24x1xf32>
    %cst_13 = arith.constant 9.99999974E-6 : f32
    %19 = vector.broadcast %cst_13 : f32 to vector<24x1xf32>
    %20 = arith.addf %18, %19 : vector<24x1xf32>
    %21 = math.rsqrt %20 : vector<24x1xf32>
    %22 = vector.broadcast %21 : vector<24x1xf32> to vector<24x64xf32>
    %23 = arith.mulf %13, %22 : vector<24x64xf32>
    %24 = vector.broadcast %6 : vector<1x64xf32> to vector<24x64xf32>
    %25 = arith.mulf %23, %24 : vector<24x64xf32>
    %26 = vector.broadcast %7 : vector<1x64xf32> to vector<24x64xf32>
    %27 = arith.addf %25, %26 : vector<24x64xf32>
    %28 = arith.negf %27 : vector<24x64xf32>
    %29 = math.exp %28 : vector<24x64xf32>
    %cst_14 = arith.constant 1.000000e+00 : f32
    %30 = vector.broadcast %cst_14 : f32 to vector<24x64xf32>
    %31 = arith.addf %30, %29 : vector<24x64xf32>
    %32 = arith.divf %30, %31 : vector<24x64xf32>
    %33 = arith.mulf %27, %32 : vector<24x64xf32>
    %c0_15 = arith.constant 0 : index
    %c0_16 = arith.constant 0 : index
    %34 = vector.load %arg6[%c0_15, %c0_16] : memref<64x64xf32, #tpu.memory_space<vmem>>, vector<64x64xf32>
    %c0_17 = arith.constant 0 : index
    %c0_18 = arith.constant 0 : index
    %35 = vector.load %arg7[%c0_17, %c0_18] : memref<1x64xf32, #tpu.memory_space<vmem>>, vector<1x64xf32>
    %cst_19 = arith.constant dense<0.000000e+00> : vector<24x64xf32>
    %36 = tpu.matmul %33, %34, %cst_19 {dimension_numbers = #tpu.dot_dimension_numbers<[1], [0], [0], [1], [0, 0, 1, 1], [], []>} : vector<24x64xf32>, vector<64x64xf32>, vector<24x64xf32> -> vector<24x64xf32>
    %37 = vector.broadcast %35 : vector<1x64xf32> to vector<24x64xf32>
    %38 = arith.addf %36, %37 : vector<24x64xf32>
    %c0_20 = arith.constant 0 : index
    %c0_21 = arith.constant 0 : index
    %39 = vector.load %arg8[%c0_20, %c0_21] : memref<1x64xf32, #tpu.memory_space<vmem>>, vector<1x64xf32>
    %c0_22 = arith.constant 0 : index
    %c0_23 = arith.constant 0 : index
    %40 = vector.load %arg9[%c0_22, %c0_23] : memref<1x64xf32, #tpu.memory_space<vmem>>, vector<1x64xf32>
    %cst_24 = arith.constant dense<0.000000e+00> : vector<24xf32>
    %41 = vector.multi_reduction <add>, %38, %cst_24 [1] : vector<24x64xf32> to vector<24xf32>
    %42 = vector.shape_cast %41 : vector<24xf32> to vector<24x1xf32>
    %cst_25 = arith.constant 6.400000e+01 : f32
    %43 = vector.broadcast %cst_25 : f32 to vector<24x1xf32>
    %44 = arith.divf %42, %43 : vector<24x1xf32>
    %45 = vector.broadcast %44 : vector<24x1xf32> to vector<24x64xf32>
    %46 = arith.subf %38, %45 : vector<24x64xf32>
    %47 = arith.mulf %46, %46 : vector<24x64xf32>
    %cst_26 = arith.constant dense<0.000000e+00> : vector<24xf32>
    %48 = vector.multi_reduction <add>, %47, %cst_26 [1] : vector<24x64xf32> to vector<24xf32>
    %49 = vector.shape_cast %48 : vector<24xf32> to vector<24x1xf32>
    %cst_27 = arith.constant 6.400000e+01 : f32
    %50 = vector.broadcast %cst_27 : f32 to vector<24x1xf32>
    %51 = arith.divf %49, %50 : vector<24x1xf32>
    %cst_28 = arith.constant 9.99999974E-6 : f32
    %52 = vector.broadcast %cst_28 : f32 to vector<24x1xf32>
    %53 = arith.addf %51, %52 : vector<24x1xf32>
    %54 = math.rsqrt %53 : vector<24x1xf32>
    %55 = vector.broadcast %54 : vector<24x1xf32> to vector<24x64xf32>
    %56 = arith.mulf %46, %55 : vector<24x64xf32>
    %57 = vector.broadcast %39 : vector<1x64xf32> to vector<24x64xf32>
    %58 = arith.mulf %56, %57 : vector<24x64xf32>
    %59 = vector.broadcast %40 : vector<1x64xf32> to vector<24x64xf32>
    %60 = arith.addf %58, %59 : vector<24x64xf32>
    %61 = arith.negf %60 : vector<24x64xf32>
    %62 = math.exp %61 : vector<24x64xf32>
    %cst_29 = arith.constant 1.000000e+00 : f32
    %63 = vector.broadcast %cst_29 : f32 to vector<24x64xf32>
    %64 = arith.addf %63, %62 : vector<24x64xf32>
    %65 = arith.divf %63, %64 : vector<24x64xf32>
    %66 = arith.mulf %60, %65 : vector<24x64xf32>
    %c0_30 = arith.constant 0 : index
    %c0_31 = arith.constant 0 : index
    %67 = vector.load %arg10[%c0_30, %c0_31] : memref<64x16xf32, #tpu.memory_space<vmem>>, vector<64x16xf32>
    %c0_32 = arith.constant 0 : index
    %c0_33 = arith.constant 0 : index
    %68 = vector.load %arg11[%c0_32, %c0_33] : memref<1x16xf32, #tpu.memory_space<vmem>>, vector<1x16xf32>
    %cst_34 = arith.constant dense<0.000000e+00> : vector<24x16xf32>
    %69 = tpu.matmul %66, %67, %cst_34 {dimension_numbers = #tpu.dot_dimension_numbers<[1], [0], [0], [1], [0, 0, 1, 1], [], []>} : vector<24x64xf32>, vector<64x16xf32>, vector<24x16xf32> -> vector<24x16xf32>
    %70 = vector.broadcast %68 : vector<1x16xf32> to vector<24x16xf32>
    %71 = arith.addf %69, %70 : vector<24x16xf32>
    %c0_35 = arith.constant 0 : index
    %c0_36 = arith.constant 0 : index
    %72 = vector.load %arg12[%c0_35, %c0_36] : memref<24x16xf32, #tpu.memory_space<vmem>>, vector<24x16xf32>
    tpu.vector_store %arg12[%c0_35, %c0_36], %71 {strides = array<i32>} : memref<24x16xf32, #tpu.memory_space<vmem>>, vector<24x16xf32>,
    return
  }
  func.func @transform_0(%arg0: i32) -> (i32, i32) {
    %c0_i32 = arith.constant 0 : i32
    %c0_i32_0 = arith.constant 0 : i32
    return %arg0, %c0_i32 : i32, i32
  }
  func.func @transform_1(%arg0: i32) -> (i32, i32) {
    %c0_i32 = arith.constant 0 : i32
    %c0_i32_0 = arith.constant 0 : i32
    %c0_i32_1 = arith.constant 0 : i32
    return %c0_i32, %c0_i32_0 : i32, i32
  }
  func.func @transform_2(%arg0: i32) -> (i32, i32) {
    %c0_i32 = arith.constant 0 : i32
    %c0_i32_0 = arith.constant 0 : i32
    %c0_i32_1 = arith.constant 0 : i32
    return %c0_i32, %c0_i32_0 : i32, i32
  }
  func.func @transform_3(%arg0: i32) -> (i32, i32) {
    %c0_i32 = arith.constant 0 : i32
    %c0_i32_0 = arith.constant 0 : i32
    %c0_i32_1 = arith.constant 0 : i32
    return %c0_i32, %c0_i32_0 : i32, i32
  }
  func.func @transform_4(%arg0: i32) -> (i32, i32) {
    %c0_i32 = arith.constant 0 : i32
    %c0_i32_0 = arith.constant 0 : i32
    %c0_i32_1 = arith.constant 0 : i32
    return %c0_i32, %c0_i32_0 : i32, i32
  }
  func.func @transform_5(%arg0: i32) -> (i32, i32) {
    %c0_i32 = arith.constant 0 : i32
    %c0_i32_0 = arith.constant 0 : i32
    %c0_i32_1 = arith.constant 0 : i32
    return %c0_i32, %c0_i32_0 : i32, i32
  }
  func.func @transform_6(%arg0: i32) -> (i32, i32) {
    %c0_i32 = arith.constant 0 : i32
    %c0_i32_0 = arith.constant 0 : i32
    %c0_i32_1 = arith.constant 0 : i32
    return %c0_i32, %c0_i32_0 : i32, i32
  }
  func.func @transform_7(%arg0: i32) -> (i32, i32) {
    %c0_i32 = arith.constant 0 : i32
    %c0_i32_0 = arith.constant 0 : i32
    %c0_i32_1 = arith.constant 0 : i32
    return %c0_i32, %c0_i32_0 : i32, i32
  }
  func.func @transform_8(%arg0: i32) -> (i32, i32) {
    %c0_i32 = arith.constant 0 : i32
    %c0_i32_0 = arith.constant 0 : i32
    %c0_i32_1 = arith.constant 0 : i32
    return %c0_i32, %c0_i32_0 : i32, i32
  }
  func.func @transform_9(%arg0: i32) -> (i32, i32) {
    %c0_i32 = arith.constant 0 : i32
    %c0_i32_0 = arith.constant 0 : i32
    %c0_i32_1 = arith.constant 0 : i32
    return %c0_i32, %c0_i32_0 : i32, i32
  }
  func.func @transform_10(%arg0: i32) -> (i32, i32) {
    %c0_i32 = arith.constant 0 : i32
    %c0_i32_0 = arith.constant 0 : i32
    %c0_i32_1 = arith.constant 0 : i32
    return %c0_i32, %c0_i32_0 : i32, i32
  }
  func.func @transform_11(%arg0: i32) -> (i32, i32) {
    %c0_i32 = arith.constant 0 : i32
    %c0_i32_0 = arith.constant 0 : i32
    return %arg0, %c0_i32 : i32, i32
  }
}

</mosaic_0001>

<bundles_post_ra>
// kernel: radial_function_forward.1
= control target key start
LH: loop header
LB: loop body
LE: loop exit
PB: predicated region body
PF: predicated region fallthrough
CT: control target
= control target key end

     0   :  { %v707_v0 = vmov 0.0|0.0   ;;  %vm708_vm0 = vmmov 0   ;;  %v709_v4 = vmov 0.0   ;;  %vm52_vm1 = vcmask 261120   ;;  %s915_s1 = inlined_call_operand.vmem [shape: f32[32,64], index: 1, kind: input, shape index: {}]   ;;  %s916_s0 = inlined_call_operand.vmem [shape: f32[24,32], index: 0, kind: input, shape index: {}]   ;;  %s917_s2 = inlined_call_operand.vmem [shape: f32[1,64], index: 2, kind: input, shape index: {}]   ;;  %s918_s5 = inlined_call_operand.vmem [shape: f32[64,64], index: 5, kind: input, shape index: {}]   ;;  %s919_s3 = inlined_call_operand.vmem [shape: f32[1,64], index: 3, kind: input, shape index: {}]   ;;  %s920_s4 = inlined_call_operand.vmem [shape: f32[1,64], index: 4, kind: input, shape index: {}]   ;;  %s921_s6 = inlined_call_operand.vmem [shape: f32[1,64], index: 6, kind: input, shape index: {}]   ;;  %s922_s9 = inlined_call_operand.vmem [shape: f32[64,16], index: 9, kind: input, shape index: {}]   ;;  %s923_s7 = inlined_call_operand.vmem [shape: f32[1,64], index: 7, kind: input, shape index: {}]   ;;  %s924_s8 = inlined_call_operand.vmem [shape: f32[1,64], index: 8, kind: input, shape index: {}]   ;;  %s925_s10 = inlined_call_operand.vmem [shape: f32[1,16], index: 10, kind: input, shape index: {}]   ;;  %s926_s11 = inlined_call_operand.vmem [shape: f32[24,16], index: 11, kind: output, shape index: {}]  }
   0x1   :  { %638 = vmatprep.subr.bf16.mxu0 %v707_v0  ;;  %v41_v1 = vld [vmem:[%s915_s1] sm:$0xff]  ;;  %v42_v2 = vld [vmem:[%s915_s1 + $0x8] sm:$0xff]  ;;  %v43_v3 = vld [vmem:[%s915_s1 + $0x10] sm:$0xff]  ;;  %579 = vmatprep.mubr.msk.f32.mxu0 %vm708_vm0, %v709_v4  ;;  %vm144_vm2 = vcmask 523264   ;;  %vm512_vm3 = vcmask 130048  }
   0x2   :  { %v639_v5 = vpack.c.bf16 %v42_v2, %v41_v1  ;;  %v44_v6 = vld [vmem:[%s915_s1 + $0x18] sm:$0xff]  ;;  %644 = vmatprep.subr.bf16.mxu1 %v707_v0  ;;  %604 = vmatprep.mubr.msk.f32.mxu1 %vm708_vm0, %v709_v4  ;;  %v38_v8 = vld [vmem:[%s916_s0] sm:$0xff]  ;;  %v39_v9 = vld [vmem:[%s916_s0 + $0x8] sm:$0xff] }
   0x3   :  { %v642_v7 = vpack.c.bf16 %v44_v6, %v43_v3  ;;  %v40_v10 = vld [vmem:[%s916_s0 + $0x10] sm:$0xff]  ;;  %v520_v11 = vld [vmem:[%s917_s2] ss:$0 sm:$0xff]  ;;  %v225_v40 = vld [vmem:[%s918_s5 + $0x8] sm:$0xff] }
   0x4   :  { %640 = vmatpush3.bf16.msra.mxu0 %v639_v5  ;;  %v224_v39 = vld [vmem:[%s918_s5] sm:$0xff]  ;;  %v226_v41 = vld [vmem:[%s918_s5 + $0x10] sm:$0xff]  ;;  %v227_v43 = vld [vmem:[%s918_s5 + $0x18] sm:$0xff] }
   0x5   :  { %641 = vmatprep.subr.bf16.mxu0 %v707_v0  ;;  %v645_v42 = vpack.c.bf16 %v225_v40, %v224_v39  ;;  %v648_v44 = vpack.c.bf16 %v227_v43, %v226_v41  ;;  %v228_v45 = vld [vmem:[%s918_s5 + $0x20] sm:$0xff]  ;;  %v229_v46 = vld [vmem:[%s918_s5 + $0x28] sm:$0xff]  ;;  %v230_v48 = vld [vmem:[%s918_s5 + $0x30] sm:$0xff] }
   0x6   :  { %v651_v47 = vpack.c.bf16 %v229_v46, %v228_v45  ;;  %v231_v49 = vld [vmem:[%s918_s5 + $0x38] sm:$0xff]  ;;  %v524_v61 = vld [vmem:[%s919_s3] ss:$0 sm:$0xff] }
   0x7   :  { %646 = vmatpush3.bf16.msra.mxu1 %v645_v42  ;;  %v654_v50 = vpack.c.bf16 %v231_v49, %v230_v48  ;;  %v525_v63 = vld [vmem:[%s920_s4] ss:$0 sm:$0xff] }
   0x8   :  { %643 = vmatpush3.bf16.msra.mxu0 %v642_v7  ;;  %647 = vmatprep.subr.bf16.mxu1 %v707_v0 }
   0x9   :  { %656 = vmatprep.subr.bf16.mxu0 %v707_v0 }
   0xb   :  { %580 = vmatmul.mubr.msk.f32.vlgmr.msra.gmra.mrb[0].mxu0 %vm52_vm1, %v38_v8  ;;  %649 = vmatpush3.bf16.msra.mxu1 %v648_v44 }
   0xc   :  { %582 = vmatprep.mubr.msk.f32.mxu0 %vm708_vm0, %v709_v4  ;;  %650 = vmatprep.subr.bf16.mxu1 %v707_v0 }
   0xf   :  { %583 = vmatmul.mubr.msk.f32.gmra.mrb[2].mxu0 %vm52_vm1, %v39_v9  ;;  %652 = vmatpush3.bf16.msra.mxu1 %v651_v47 }
  0x10   :  { %585 = vmatprep.mubr.msk.f32.mxu0 %vm708_vm0, %v709_v4  ;;  %653 = vmatprep.subr.bf16.mxu1 %v707_v0 }
  0x13   :  { %586 = vmatmul.mubr.msk.f32.gmra.mrb[4].mxu0 %vm52_vm1, %v40_v10  ;;  %655 = vmatpush3.bf16.msra.mxu1 %v654_v50 }
  0x14   :  { %629 = vmatprep.mubr.msk.f32.mxu0 %vm708_vm0, %v709_v4 }
  0xde   :  { %v128_v12 = vpop.f32.mrb[0].mxu0 }
  0xdf   :  { %v129_v13 = vadd.f32 %v520_v11, %v128_v12  ;;  %v581_v14 = vpop.f32.mrb[1].mxu0 }
  0xe1   :  { %v145_v15 = vsel %vm144_vm2, %v129_v13, 0.0 }
  0xe2   :  { %146 = vadd.xlane.f32.xlu0 %v145_v15  ;;  %v133_v16 = vpop.f32.mrb[2].mxu0 }
  0xe3   :  { %v134_v17 = vadd.f32 %v520_v11, %v133_v16  ;;  %v584_v18 = vpop.f32.mrb[3].mxu0 }
  0xe5   :  { %v148_v19 = vsel %vm144_vm2, %v134_v17, 0.0 }
  0xe6   :  { %149 = vadd.xlane.f32.xlu0 %v148_v19  ;;  %v138_v20 = vpop.f32.mrb[4].mxu0 }
  0xe7   :  { %v139_v21 = vadd.f32 %v520_v11, %v138_v20  ;;  %v587_v22 = vpop.f32.mrb[5].mxu0 }
  0xe9   :  { %v151_v23 = vsel %vm144_vm2, %v139_v21, 0.0 }
  0xea   :  { %152 = vadd.xlane.f32.xlu1 %v151_v23 }
 0x16f   :  { %v147_v24 = vpop.xlane.xlu0 %146 }
 0x170   :  { %v155_v25 = vmul.f32 0.015625, %v147_v24 }
 0x172   :  { %v158_v26 = vsub.f32 %v129_v13, %v155_v25 }
 0x173   :  { %v150_v27 = vpop.xlane.xlu0 %149 }
 0x174   :  { %v156_v28 = vmul.f32 0.015625, %v150_v27  ;;  %v161_v29 = vmul.f32 %v158_v26, %v158_v26  ;;  %v529_v27 = vld [vmem:[%s921_s6] ss:$0 sm:$0xff] }
 0x176   :  { %v159_v30 = vsub.f32 %v134_v17, %v156_v28  ;;  %v164_v31 = vsel %vm144_vm2, %v161_v29, 0.0 }
 0x177   :  { %165 = vadd.xlane.f32.xlu1 %v164_v31  ;;  %v153_v32 = vpop.xlane.xlu1 %152 }
 0x178   :  { %v157_v33 = vmul.f32 0.015625, %v153_v32  ;;  %v162_v34 = vmul.f32 %v159_v30, %v159_v30 }
 0x17a   :  { %v160_v35 = vsub.f32 %v139_v21, %v157_v33  ;;  %v167_v36 = vsel %vm144_vm2, %v162_v34, 0.0 }
 0x17b   :  { %168 = vadd.xlane.f32.xlu0 %v167_v36 }
 0x17c   :  { %v163_v37 = vmul.f32 %v160_v35, %v160_v35 }
 0x17e   :  { %v170_v38 = vsel %vm144_vm2, %v163_v37, 0.0 }
 0x17f   :  { %171 = vadd.xlane.f32.xlu1 %v170_v38 }
 0x204   :  { %v166_v51 = vpop.xlane.xlu1 %165 }
 0x205   :  { %v173_v52 = vmul.f32 0.015625, %v166_v51 }
 0x207   :  { %v176_v53 = vadd.f32 1e-05, %v173_v52 }
 0x208   :  { %v169_v54 = vpop.xlane.xlu0 %168 }
 0x209   :  { %671 = vrsqrt.f32 %v176_v53  ;;  %v174_v55 = vmul.f32 0.015625, %v169_v54 }
 0x20b   :  { %v177_v56 = vadd.f32 1e-05, %v174_v55  ;;  %v408_v55 = vld [vmem:[%s922_s9] sm:$0xff] }
 0x20c   :  { %v172_v57 = vpop.xlane.xlu1 %171 }
 0x20d   :  { %673 = vrsqrt.f32 %v177_v56  ;;  %v175_v58 = vmul.f32 0.015625, %v172_v57  ;;  %v409_v56 = vld [vmem:[%s922_s9 + $0x8] sm:$0xff] }
 0x20e   :  { %v657_v57 = vpack.c.bf16 %v409_v56, %v408_v55 }
 0x20f   :  { %v178_v59 = vadd.f32 1e-05, %v175_v58  ;;  %v410_v58 = vld [vmem:[%s922_s9 + $0x10] sm:$0xff] }
 0x210   :  { %658 = vmatpush3.bf16.msra.mxu0 %v657_v57 }
 0x211   :  { %675 = vrsqrt.f32 %v178_v59  ;;  %659 = vmatprep.subr.bf16.mxu0 %v707_v0  ;;  %v411_v59 = vld [vmem:[%s922_s9 + $0x18] sm:$0xff] }
 0x213   :  { %v672_v60 = vpop.eup %671 }
 0x214   :  { %v182_v62 = vmul.f32 %v672_v60, %v158_v26  ;;  %v660_v60 = vpack.c.bf16 %v411_v59, %v410_v58 }
 0x216   :  { %v191_v1 = vmul.f32 %v524_v61, %v182_v62  ;;  %v413_v62 = vld [vmem:[%s922_s9 + $0x28] sm:$0xff]  ;;  %661 = vmatpush3.bf16.msra.mxu0 %v660_v60 }
 0x217   :  { %v674_v2 = vpop.eup %673  ;;  %662 = vmatprep.subr.bf16.mxu0 %v707_v0 }
 0x218   :  { %v183_v3 = vmul.f32 %v674_v2, %v159_v30  ;;  %v200_v5 = vadd.f32 %v525_v63, %v191_v1  ;;  %v414_v1 = vld [vmem:[%s922_s9 + $0x30] sm:$0xff]  ;;  %v415_v2 = vld [vmem:[%s922_s9 + $0x38] sm:$0xff] }
 0x21a   :  { %v526_v6 = vmul.f32 -1.442695, %v200_v5  ;;  %v192_v7 = vmul.f32 %v524_v61, %v183_v3  ;;  %v666_v3 = vpack.c.bf16 %v415_v2, %v414_v1 }
 0x21b   :  { %v676_v8 = vpop.eup %675 }
 0x21c   :  { %v184_v9 = vmul.f32 %v676_v8, %v160_v35  ;;  %677 = vpow2.f32 %v526_v6  ;;  %v201_v10 = vadd.f32 %v525_v63, %v192_v7 }
 0x21e   :  { %v527_v11 = vmul.f32 -1.442695, %v201_v10  ;;  %v193_v12 = vmul.f32 %v524_v61, %v184_v9  ;;  %v412_v61 = vld [vmem:[%s922_s9 + $0x20] sm:$0xff] }
 0x220   :  { %679 = vpow2.f32 %v527_v11  ;;  %v202_v13 = vadd.f32 %v525_v63, %v193_v12  ;;  %v663_v63 = vpack.c.bf16 %v413_v62, %v412_v61 }
 0x222   :  { %v528_v14 = vmul.f32 -1.442695, %v202_v13  ;;  %664 = vmatpush3.bf16.msra.mxu0 %v663_v63 }
 0x223   :  { %665 = vmatprep.subr.bf16.mxu0 %v707_v0  ;;  %v534_v0 = vld [vmem:[%s924_s8] ss:$0 sm:$0xff] }
 0x224   :  { %681 = vpow2.f32 %v528_v14 }
 0x226   :  { %v678_v15 = vpop.eup %677  ;;  %667 = vmatpush3.bf16.msra.mxu0 %v666_v3 }
 0x227   :  { %v212_v16 = vadd.f32 1.0, %v678_v15  ;;  %v533_v15 = vld [vmem:[%s923_s7] ss:$0 sm:$0xff] }
 0x229   :  { %683 = vrcp.f32 %v212_v16 }
 0x22a   :  { %v680_v17 = vpop.eup %679 }
 0x22b   :  { %v213_v18 = vadd.f32 1.0, %v680_v17 }
 0x22d   :  { %685 = vrcp.f32 %v213_v18 }
 0x22e   :  { %v682_v19 = vpop.eup %681 }
 0x22f   :  { %v214_v20 = vadd.f32 1.0, %v682_v19 }
 0x231   :  { %687 = vrcp.f32 %v214_v20 }
 0x233   :  { %v684_v21 = vpop.eup %683 }
 0x234   :  { %v221_v22 = vmul.f32 %v684_v21, %v200_v5 }
 0x236   :  { %605 = vmatmul.mubr.msk.f32.vlgmr.msra.gmra.mrb[0].mxu1 %vm144_vm2, %v221_v22 }
 0x237   :  { %v686_v23 = vpop.eup %685  ;;  %607 = vmatprep.mubr.msk.f32.mxu1 %vm708_vm0, %v709_v4 }
 0x238   :  { %v222_v24 = vmul.f32 %v686_v23, %v201_v10 }
 0x23a   :  { %608 = vmatmul.mubr.msk.f32.gmra.mrb[2].mxu1 %vm144_vm2, %v222_v24 }
 0x23b   :  { %v688_v25 = vpop.eup %687  ;;  %610 = vmatprep.mubr.msk.f32.mxu1 %vm708_vm0, %v709_v4 }
 0x23c   :  { %v223_v26 = vmul.f32 %v688_v25, %v202_v13 }
 0x23e   :  { %611 = vmatmul.mubr.msk.f32.gmra.mrb[4].mxu1 %vm144_vm2, %v223_v26 }
 0x309   :  { %v314_v28 = vpop.f32.mrb[0].mxu1 }
 0x30a   :  { %v315_v29 = vadd.f32 %v529_v27, %v314_v28  ;;  %v606_v30 = vpop.f32.mrb[1].mxu1 }
 0x30c   :  { %v330_v31 = vsel %vm144_vm2, %v315_v29, 0.0 }
 0x30d   :  { %331 = vadd.xlane.f32.xlu0 %v330_v31  ;;  %v319_v32 = vpop.f32.mrb[2].mxu1 }
 0x30e   :  { %v320_v33 = vadd.f32 %v529_v27, %v319_v32  ;;  %v609_v34 = vpop.f32.mrb[3].mxu1 }
 0x310   :  { %v333_v35 = vsel %vm144_vm2, %v320_v33, 0.0 }
 0x311   :  { %334 = vadd.xlane.f32.xlu1 %v333_v35  ;;  %v324_v36 = vpop.f32.mrb[4].mxu1 }
 0x312   :  { %v325_v37 = vadd.f32 %v529_v27, %v324_v36  ;;  %v612_v38 = vpop.f32.mrb[5].mxu1 }
 0x314   :  { %v336_v39 = vsel %vm144_vm2, %v325_v37, 0.0 }
 0x315   :  { %337 = vadd.xlane.f32.xlu0 %v336_v39 }
 0x39a   :  { %v332_v40 = vpop.xlane.xlu0 %331 }
 0x39b   :  { %v339_v41 = vmul.f32 0.015625, %v332_v40 }
 0x39d   :  { %v342_v42 = vsub.f32 %v315_v29, %v339_v41 }
 0x39e   :  { %v335_v43 = vpop.xlane.xlu1 %334 }
 0x39f   :  { %v340_v44 = vmul.f32 0.015625, %v335_v43  ;;  %v345_v45 = vmul.f32 %v342_v42, %v342_v42 }
 0x3a1   :  { %v343_v46 = vsub.f32 %v320_v33, %v340_v44  ;;  %v348_v47 = vsel %vm144_vm2, %v345_v45, 0.0 }
 0x3a2   :  { %349 = vadd.xlane.f32.xlu1 %v348_v47  ;;  %v338_v48 = vpop.xlane.xlu0 %337 }
 0x3a3   :  { %v341_v49 = vmul.f32 0.015625, %v338_v48  ;;  %v346_v50 = vmul.f32 %v343_v46, %v343_v46 }
 0x3a5   :  { %v344_v51 = vsub.f32 %v325_v37, %v341_v49  ;;  %v351_v52 = vsel %vm144_vm2, %v346_v50, 0.0 }
 0x3a6   :  { %352 = vadd.xlane.f32.xlu0 %v351_v52 }
 0x3a7   :  { %v347_v53 = vmul.f32 %v344_v51, %v344_v51 }
 0x3a9   :  { %v354_v54 = vsel %vm144_vm2, %v347_v53, 0.0 }
 0x3aa   :  { %355 = vadd.xlane.f32.xlu1 %v354_v54 }
 0x42f   :  { %v350_v5 = vpop.xlane.xlu1 %349 }
 0x430   :  { %v357_v6 = vmul.f32 0.015625, %v350_v5 }
 0x432   :  { %v360_v7 = vadd.f32 1e-05, %v357_v6 }
 0x433   :  { %v353_v8 = vpop.xlane.xlu0 %352 }
 0x434   :  { %689 = vrsqrt.f32 %v360_v7  ;;  %v358_v9 = vmul.f32 0.015625, %v353_v8 }
 0x436   :  { %v361_v10 = vadd.f32 1e-05, %v358_v9 }
 0x437   :  { %v356_v11 = vpop.xlane.xlu1 %355 }
 0x438   :  { %691 = vrsqrt.f32 %v361_v10  ;;  %v359_v12 = vmul.f32 0.015625, %v356_v11 }
 0x43a   :  { %v362_v13 = vadd.f32 1e-05, %v359_v12 }
 0x43c   :  { %693 = vrsqrt.f32 %v362_v13 }
 0x43e   :  { %v690_v14 = vpop.eup %689 }
 0x43f   :  { %v366_v16 = vmul.f32 %v690_v14, %v342_v42  ;;  %v538_v42 = vld [vmem:[%s925_s10] ss:$0 sm:$0xff] }
 0x441   :  { %v375_v17 = vmul.f32 %v533_v15, %v366_v16 }
 0x442   :  { %v692_v18 = vpop.eup %691 }
 0x443   :  { %v384_v19 = vadd.f32 %v534_v0, %v375_v17  ;;  %v367_v20 = vmul.f32 %v692_v18, %v343_v46 }
 0x445   :  { %v535_v21 = vmul.f32 -1.442695, %v384_v19  ;;  %v376_v22 = vmul.f32 %v533_v15, %v367_v20 }
 0x446   :  { %v694_v23 = vpop.eup %693 }
 0x447   :  { %695 = vpow2.f32 %v535_v21  ;;  %v368_v24 = vmul.f32 %v694_v23, %v344_v51  ;;  %v385_v25 = vadd.f32 %v534_v0, %v376_v22 }
 0x449   :  { %v536_v26 = vmul.f32 -1.442695, %v385_v25  ;;  %v377_v27 = vmul.f32 %v533_v15, %v368_v24 }
 0x44b   :  { %697 = vpow2.f32 %v536_v26  ;;  %v386_v28 = vadd.f32 %v534_v0, %v377_v27 }
 0x44d   :  { %v537_v29 = vmul.f32 -1.442695, %v386_v28 }
 0x44f   :  { %699 = vpow2.f32 %v537_v29 }
 0x451   :  { %v696_v30 = vpop.eup %695 }
 0x452   :  { %v396_v31 = vadd.f32 1.0, %v696_v30 }
 0x454   :  { %701 = vrcp.f32 %v396_v31 }
 0x455   :  { %v698_v32 = vpop.eup %697 }
 0x456   :  { %v397_v33 = vadd.f32 1.0, %v698_v32 }
 0x458   :  { %703 = vrcp.f32 %v397_v33 }
 0x459   :  { %v700_v34 = vpop.eup %699 }
 0x45a   :  { %v398_v35 = vadd.f32 1.0, %v700_v34 }
 0x45c   :  { %705 = vrcp.f32 %v398_v35 }
 0x45e   :  { %v702_v36 = vpop.eup %701 }
 0x45f   :  { %v405_v37 = vmul.f32 %v702_v36, %v384_v19 }
 0x461   :  { %630 = vmatmul.mubr.msk.f32.vlgmr.msra.gmra.mrb[6].mxu0 %vm144_vm2, %v405_v37 }
 0x462   :  { %v704_v38 = vpop.eup %703  ;;  %632 = vmatprep.mubr.msk.f32.mxu0 %vm708_vm0, %v709_v4 }
 0x463   :  { %v406_v39 = vmul.f32 %v704_v38, %v385_v25 }
 0x465   :  { %633 = vmatmul.mubr.msk.f32.gmra.mrb[8].mxu0 %vm144_vm2, %v406_v39 }
 0x466   :  { %v706_v40 = vpop.eup %705  ;;  %635 = vmatprep.mubr.msk.f32.mxu0 %vm708_vm0, %v709_v4 }
 0x467   :  { %v407_v41 = vmul.f32 %v706_v40, %v386_v28 }
 0x469   :  { %636 = vmatmul.mubr.msk.f32.gmra.mrb[10].mxu0 %vm144_vm2, %v407_v41 }
 0x534   :  { %v498_v43 = vpop.f32.mrb[6].mxu0 }
 0x535   :  { %v499_v44 = vadd.f32 %v538_v42, %v498_v43  ;;  %v631_v45 = vpop.f32.mrb[7].mxu0 }
 0x537   :  { %513 = vst.msk [vmem:[%s926_s11] sm:$0xff] %vm512_vm3, %v499_v44 }
 0x538   :  { %v503_v46 = vpop.f32.mrb[8].mxu0 }
 0x539   :  { %v504_v47 = vadd.f32 %v538_v42, %v503_v46  ;;  %v634_v48 = vpop.f32.mrb[9].mxu0 }
 0x53b   :  { %514 = vst.msk [vmem:[%s926_s11 + $0x8] sm:$0xff] %vm512_vm3, %v504_v47 }
 0x53c   :  { %v508_v4 = vpop.f32.mrb[10].mxu0 }
 0x53d   :  { %v509_v49 = vadd.f32 %v538_v42, %v508_v4  ;;  %v637_v50 = vpop.f32.mrb[11].mxu0 }
 0x53f   :  { %515 = vst.msk [vmem:[%s926_s11 + $0x10] sm:$0xff] %vm512_vm3, %v509_v49 }

</bundles_post_ra>
